<compile_context>
chip_gen: v6e
topology: v6e:2x2x1
jax: 0.10.0
libtpu: 0.0.40
codegen_flags: <defaults>
</compile_context>

<pallas_src>
import functools

import jax
import jax.numpy as jnp
from jax.experimental import pallas as pl
from jax.experimental.pallas import tpu as pltpu


def _round_up(x, m):
    return ((x + m - 1) // m) * m


def _grad_loss_kernel(op_ref, gt_ref, psum_ref, dprev_ref, sprev_ref, *, ho, wo):
    """Processes one (row_tile, w4) tile of both padded gray images.

    op_ref / gt_ref : (1, th, w4)  padded gray tiles (float32).
    psum_ref        : (1, 1, w4)   per-image column partial sums (accumulated over r).
    dprev/sprev_ref : (2, 2, w4)   carried horizontal-stage results (d and s) for the
                                   last two rows of the previous row tile; [0]=output, [1]=gt.
    """
    r = pl.program_id(1)
    th = op_ref.shape[1]
    w4 = op_ref.shape[2]

    @pl.when(r == 0)
    def _init():
        psum_ref[...] = jnp.zeros_like(psum_ref)

    row = jax.lax.broadcasted_iota(jnp.int32, (th, w4), 0)
    col = jax.lax.broadcasted_iota(jnp.int32, (th, w4), 1)
    is_row0 = row == 0
    is_row1 = row == 1

    def tile_grad_mag(x_ref, img):
        x = x_ref[0]                                  # (th, w4)
        # Separable Sobel, horizontal (lane) stage via XLU rolls.
        x_j1 = pltpu.roll(x, w4 - 1, axis=1)          # x(i, j+1)
        x_j2 = pltpu.roll(x, w4 - 2, axis=1)          # x(i, j+2)
        d = x_j2 - x                                  # [-1, 0, 1] along W
        s = x + (x_j1 + x_j1) + x_j2                  # [ 1, 2, 1] along W
        # 2-row halo carried from the previous row tile (garbage at r == 0,
        # but the rows that consume it map to masked output rows).
        dc = dprev_ref[img]                           # (2, w4)
        sc = sprev_ref[img]
        d_m1 = pltpu.roll(d, 1, axis=0)               # d(i-1), row 0 from carry
        d_m1 = jnp.where(is_row0, dc[1:2], d_m1)
        d_m2 = pltpu.roll(d, 2, axis=0)               # d(i-2), rows 0,1 from carry
        d_m2 = jnp.where(is_row0, dc[0:1], jnp.where(is_row1, dc[1:2], d_m2))
        s_m2 = pltpu.roll(s, 2, axis=0)               # s(i-2), rows 0,1 from carry
        s_m2 = jnp.where(is_row0, sc[0:1], jnp.where(is_row1, sc[1:2], s_m2))
        # Save carry for the next row tile of this image.
        dprev_ref[img] = d[th - 2:, :]
        sprev_ref[img] = s[th - 2:, :]
        # Vertical (sublane) stage.
        xh = d_m2 + (d_m1 + d_m1) + d                 # Sobel-x (weight_h) response
        xv = s - s_m2                                 # Sobel-y (weight_v) response
        return jnp.sqrt(xh * xh + xv * xv + 1e-6)

    mag_o = tile_grad_mag(op_ref, 0)
    mag_g = tile_grad_mag(gt_ref, 1)

    # Local row k holds conv-output row (r*th + k - 2); mask padding/wrap-around.
    g_row = r * th + row - 2
    valid = (g_row >= 0) & (g_row < ho) & (col < wo)
    contrib = jnp.where(valid, jnp.abs(mag_o - mag_g), 0.0)
    psum_ref[...] = psum_ref[...] + jnp.sum(contrib, axis=0, keepdims=True)[None]


def _get_gray(x):
    # Matches GradLayer.get_gray (only applied when C == 3); returns (N, H, W).
    x = x.astype(jnp.float32)
    if x.shape[1] == 3:
        coeffs = jnp.asarray([65.738, 129.057, 25.064], jnp.float32) / 256.0
        return jnp.einsum("nchw,c->nhw", x, coeffs)
    if x.shape[1] == 1:
        return x[:, 0]
    raise ValueError("GradLoss expects 1- or 3-channel NCHW inputs")


def _pad_for_kernel(gray, h4, w4):
    n, h, w = gray.shape
    # F.pad(..., (1,1,1,1), mode='reflect')
    x = jnp.pad(gray, ((0, 0), (1, 1), (1, 1)), mode="reflect")
    # conv2d(padding=1) zero border, fused with the lane/sublane alignment pad.
    x = jnp.pad(x, ((0, 0), (1, h4 - (h + 3)), (1, w4 - (w + 3))))
    return x


def grad_loss(output, gt_img, *, row_tile=None):
    if output.shape != gt_img.shape:
        raise ValueError("output and gt_img must have the same shape")
    n, _, h, w = output.shape
    ho, wo = h + 2, w + 2                    # conv output spatial size (GradLayer)
    w4 = _round_up(w + 4, 128)               # lane-dense padded width

    if row_tile is None:
        # ~2 MiB f32 input tile: fits v7x's 64 MiB VMEM with double buffering.
        row_tile = max(8, min(256, ((2 * 1024 * 1024) // (w4 * 4)) // 8 * 8))
    row_tile = max(8, (row_tile // 8) * 8)
    row_tile = min(row_tile, _round_up(h + 4, 8))
    r_tiles = pl.cdiv(h + 4, row_tile)
    h4 = r_tiles * row_tile                  # padded height (multiple of row_tile)

    o_p = _pad_for_kernel(_get_gray(output), h4, w4)
    g_p = _pad_for_kernel(_get_gray(gt_img), h4, w4)

    kernel = functools.partial(_grad_loss_kernel, ho=ho, wo=wo)
    col_sums = pl.pallas_call(
        kernel,
        out_shape=jax.ShapeDtypeStruct((n, 1, w4), jnp.float32),
        grid_spec=pltpu.PrefetchScalarGridSpec(
            num_scalar_prefetch=0,
            grid=(n, r_tiles),
            in_specs=[
                pl.BlockSpec((1, row_tile, w4), lambda i, r: (i, r, 0)),
                pl.BlockSpec((1, row_tile, w4), lambda i, r: (i, r, 0)),
            ],
            out_specs=pl.BlockSpec((1, 1, w4), lambda i, r: (i, 0, 0)),
            scratch_shapes=[
                pltpu.VMEM((2, 2, w4), jnp.float32),   # d-carry (output, gt)
                pltpu.VMEM((2, 2, w4), jnp.float32),   # s-carry (output, gt)
            ],
        ),
        compiler_params=pltpu.CompilerParams(
            dimension_semantics=("parallel", "arbitrary"),
            vmem_limit_bytes=48 * 1024 * 1024,
        ),
    )(o_p, g_p)

    # nn.L1Loss(reduction='mean') over the (N, 1, H+2, W+2) gradient maps.
    return jnp.sum(col_sums) / jnp.float32(n * ho * wo)


def _reference_grad_loss(output, gt_img):
    """Pure-JAX port of the PyTorch GradLoss, used only for verification."""
    sobel_x = jnp.asarray([[-1., 0., 1.], [-2., 0., 2.], [-1., 0., 1.]], jnp.float32)
    sobel_y = jnp.asarray([[-1., -2., -1.], [0., 0., 0.], [1., 2., 1.]], jnp.float32)

    def grad_layer(x):
        if x.shape[1] == 3:
            coeffs = jnp.asarray([65.738, 129.057, 25.064], jnp.float32) / 256.0
            x = jnp.sum(x * coeffs[None, :, None, None], axis=1, keepdims=True)
        x = jnp.pad(x, ((0, 0), (0, 0), (1, 1), (1, 1)), mode="reflect")
        x = jnp.pad(x, ((0, 0), (0, 0), (1, 1), (1, 1)))
        hp, wp = x.shape[2], x.shape[3]

        def conv3x3(img, k):
            out = jnp.zeros((img.shape[0], 1, hp - 2, wp - 2), jnp.float32)
            for di in range(3):
                for dj in range(3):
                    out = out + k[di, dj] * img[:, :, di:di + hp - 2, dj:dj + wp - 2]
            return out

        xv = conv3x3(x, sobel_y)
        xh = conv3x3(x, sobel_x)
        return jnp.sqrt(xv * xv + xh * xh + 1e-6)

    return jnp.mean(jnp.abs(grad_layer(output.astype(jnp.float32))
                            - grad_layer(gt_img.astype(jnp.float32))))


if __name__ == "__main__":
    key = jax.random.PRNGKey(0)
    k1, k2 = jax.random.split(key)
    out_img = jax.random.uniform(k1, (2, 3, 16, 16), dtype=jnp.float32)
    gt_img = jax.random.uniform(k2, (2, 3, 16, 16), dtype=jnp.float32)

    # row_tile=8 -> 3 row tiles per image: exercises the carried-halo path.
    loss = jax.jit(functools.partial(grad_loss, row_tile=8))(out_img, gt_img)
    loss = jax.block_until_ready(loss)

    ref = jax.block_until_ready(jax.jit(_reference_grad_loss)(out_img, gt_img))
    if not abs(float(loss) - float(ref)) <= 1e-5 + 1e-4 * abs(float(ref)):
        raise AssertionError(f"Pallas GradLoss mismatch: {float(loss)} vs {float(ref)}")
    print("KERNEL_OK")
</pallas_src>

<mosaic_0001>
module attributes {stable_mosaic.version = 11 : i64} {
  func.func @_grad_loss_kernel(%arg0: i32, %arg1: i32, %arg2: memref<1x8x128xf32, #tpu.memory_space<vmem>>, %arg3: memref<1x8x128xf32, #tpu.memory_space<vmem>>, %arg4: memref<1x1x128xf32, #tpu.memory_space<vmem>>, %arg5: memref<2x2x128xf32, #tpu.memory_space<vmem>>, %arg6: memref<2x2x128xf32, #tpu.memory_space<vmem>>) attributes {dimension_semantics = [#tpu.dimension_semantics<parallel>, #tpu.dimension_semantics<arbitrary>], iteration_bounds = array<i64: 2, 3>, scalar_prefetch = 0 : i64, scratch_operands = 2 : i64, tpu.core_type = #tpu.core_type<tc>, window_params = [{transform_indices = @transform_0, window_bounds = array<i64: 1, 8, 128>}, {transform_indices = @transform_1, window_bounds = array<i64: 1, 8, 128>}, {transform_indices = @transform_2, window_bounds = array<i64: 1, 1, 128>}]} {
    %c0_i32 = arith.constant 0 : i32
    %0 = arith.cmpi eq, %arg1, %c0_i32 : i32
    %1 = arith.extui %0 : i1 to i32
    %c0_i32_0 = arith.constant 0 : i32
    %2 = arith.cmpi ne, %1, %c0_i32_0 : i32
    scf.if %2 {
      %cst_49 = arith.constant 0.000000e+00 : f32
      %138 = vector.broadcast %cst_49 : f32 to vector<1x1x128xf32>
      %c0_50 = arith.constant 0 : index
      %c0_51 = arith.constant 0 : index
      %c0_52 = arith.constant 0 : index
      %139 = vector.load %arg4[%c0_50, %c0_51, %c0_52] : memref<1x1x128xf32, #tpu.memory_space<vmem>>, vector<1x1x128xf32>
      tpu.vector_store %arg4[%c0_50, %c0_51, %c0_52], %138 {strides = array<i32>} : memref<1x1x128xf32, #tpu.memory_space<vmem>>, vector<1x1x128xf32>,
    } else {
    }
    %3 = tpu.iota {dimensions = array<i32: 0>} : vector<8x128xi32>
    %4 = tpu.iota {dimensions = array<i32: 1>} : vector<8x128xi32>
    %c0_i32_1 = arith.constant 0 : i32
    %5 = vector.broadcast %c0_i32_1 : i32 to vector<8x128xi32>
    %6 = arith.cmpi eq, %3, %5 : vector<8x128xi32>
    %c1_i32 = arith.constant 1 : i32
    %7 = vector.broadcast %c1_i32 : i32 to vector<8x128xi32>
    %8 = arith.cmpi eq, %3, %7 : vector<8x128xi32>
    %c0 = arith.constant 0 : index
    %c0_2 = arith.constant 0 : index
    %c0_3 = arith.constant 0 : index
    %9 = vector.load %arg2[%c0, %c0_2, %c0_3] : memref<1x8x128xf32, #tpu.memory_space<vmem>>, vector<1x8x128xf32>
    %10 = vector.shape_cast %9 : vector<1x8x128xf32> to vector<8x128xf32>
    %c127_i32 = arith.constant 127 : i32
    %11 = tpu.dynamic_rotate %10 by %c127_i32 dim 1 : vector<8x128xf32>, i32 -> vector<8x128xf32>
    %c126_i32 = arith.constant 126 : i32
    %12 = tpu.dynamic_rotate %10 by %c126_i32 dim 1 : vector<8x128xf32>, i32 -> vector<8x128xf32>
    %13 = arith.subf %12, %10 : vector<8x128xf32>
    %14 = arith.addf %11, %11 : vector<8x128xf32>
    %15 = arith.addf %10, %14 : vector<8x128xf32>
    %16 = arith.addf %15, %12 : vector<8x128xf32>
    %c0_4 = arith.constant 0 : index
    %c0_5 = arith.constant 0 : index
    %c0_6 = arith.constant 0 : index
    %17 = vector.load %arg5[%c0_4, %c0_5, %c0_6] : memref<2x2x128xf32, #tpu.memory_space<vmem>>, vector<1x2x128xf32>
    %18 = vector.shape_cast %17 : vector<1x2x128xf32> to vector<2x128xf32>
    %c0_7 = arith.constant 0 : index
    %c0_8 = arith.constant 0 : index
    %c0_9 = arith.constant 0 : index
    %19 = vector.load %arg6[%c0_7, %c0_8, %c0_9] : memref<2x2x128xf32, #tpu.memory_space<vmem>>, vector<1x2x128xf32>
    %20 = vector.shape_cast %19 : vector<1x2x128xf32> to vector<2x128xf32>
    %c1_i32_10 = arith.constant 1 : i32
    %21 = tpu.dynamic_rotate %13 by %c1_i32_10 dim 0 : vector<8x128xf32>, i32 -> vector<8x128xf32>
    %22 = vector.extract_strided_slice %18 {offsets = [1, 0], sizes = [1, 128], strides = [1, 1]} : vector<2x128xf32> to vector<1x128xf32>
    %23 = vector.shape_cast %22 : vector<1x128xf32> to vector<1x128xf32>
    %24 = vector.broadcast %23 : vector<1x128xf32> to vector<8x128xf32>
    %25 = arith.select %6, %24, %21 : vector<8x128xi1>, vector<8x128xf32>
    %c2_i32 = arith.constant 2 : i32
    %26 = tpu.dynamic_rotate %13 by %c2_i32 dim 0 : vector<8x128xf32>, i32 -> vector<8x128xf32>
    %27 = vector.extract_strided_slice %18 {offsets = [0, 0], sizes = [1, 128], strides = [1, 1]} : vector<2x128xf32> to vector<1x128xf32>
    %28 = vector.extract_strided_slice %18 {offsets = [1, 0], sizes = [1, 128], strides = [1, 1]} : vector<2x128xf32> to vector<1x128xf32>
    %29 = vector.shape_cast %28 : vector<1x128xf32> to vector<1x128xf32>
    %30 = vector.broadcast %29 : vector<1x128xf32> to vector<8x128xf32>
    %31 = arith.select %8, %30, %26 : vector<8x128xi1>, vector<8x128xf32>
    %32 = vector.shape_cast %27 : vector<1x128xf32> to vector<1x128xf32>
    %33 = vector.broadcast %32 : vector<1x128xf32> to vector<8x128xf32>
    %34 = arith.select %6, %33, %31 : vector<8x128xi1>, vector<8x128xf32>
    %c2_i32_11 = arith.constant 2 : i32
    %35 = tpu.dynamic_rotate %16 by %c2_i32_11 dim 0 : vector<8x128xf32>, i32 -> vector<8x128xf32>
    %36 = vector.extract_strided_slice %20 {offsets = [0, 0], sizes = [1, 128], strides = [1, 1]} : vector<2x128xf32> to vector<1x128xf32>
    %37 = vector.extract_strided_slice %20 {offsets = [1, 0], sizes = [1, 128], strides = [1, 1]} : vector<2x128xf32> to vector<1x128xf32>
    %38 = vector.shape_cast %37 : vector<1x128xf32> to vector<1x128xf32>
    %39 = vector.broadcast %38 : vector<1x128xf32> to vector<8x128xf32>
    %40 = arith.select %8, %39, %35 : vector<8x128xi1>, vector<8x128xf32>
    %41 = vector.shape_cast %36 : vector<1x128xf32> to vector<1x128xf32>
    %42 = vector.broadcast %41 : vector<1x128xf32> to vector<8x128xf32>
    %43 = arith.select %6, %42, %40 : vector<8x128xi1>, vector<8x128xf32>
    %44 = vector.extract_strided_slice %13 {offsets = [6, 0], sizes = [2, 128], strides = [1, 1]} : vector<8x128xf32> to vector<2x128xf32>
    %c0_12 = arith.constant 0 : index
    %c0_13 = arith.constant 0 : index
    %c0_14 = arith.constant 0 : index
    %45 = vector.load %arg5[%c0_12, %c0_13, %c0_14] : memref<2x2x128xf32, #tpu.memory_space<vmem>>, vector<1x2x128xf32>
    %46 = vector.shape_cast %45 : vector<1x2x128xf32> to vector<2x128xf32>
    %47 = vector.shape_cast %44 : vector<2x128xf32> to vector<1x2x128xf32>
    tpu.vector_store %arg5[%c0_12, %c0_13, %c0_14], %47 {strides = array<i32>} : memref<2x2x128xf32, #tpu.memory_space<vmem>>, vector<1x2x128xf32>,
    %48 = vector.extract_strided_slice %16 {offsets = [6, 0], sizes = [2, 128], strides = [1, 1]} : vector<8x128xf32> to vector<2x128xf32>
    %c0_15 = arith.constant 0 : index
    %c0_16 = arith.constant 0 : index
    %c0_17 = arith.constant 0 : index
    %49 = vector.load %arg6[%c0_15, %c0_16, %c0_17] : memref<2x2x128xf32, #tpu.memory_space<vmem>>, vector<1x2x128xf32>
    %50 = vector.shape_cast %49 : vector<1x2x128xf32> to vector<2x128xf32>
    %51 = vector.shape_cast %48 : vector<2x128xf32> to vector<1x2x128xf32>
    tpu.vector_store %arg6[%c0_15, %c0_16, %c0_17], %51 {strides = array<i32>} : memref<2x2x128xf32, #tpu.memory_space<vmem>>, vector<1x2x128xf32>,
    %52 = arith.addf %25, %25 : vector<8x128xf32>
    %53 = arith.addf %34, %52 : vector<8x128xf32>
    %54 = arith.addf %53, %13 : vector<8x128xf32>
    %55 = arith.subf %16, %43 : vector<8x128xf32>
    %56 = arith.mulf %54, %54 : vector<8x128xf32>
    %57 = arith.mulf %55, %55 : vector<8x128xf32>
    %58 = arith.addf %56, %57 : vector<8x128xf32>
    %cst = arith.constant 9.99999997E-7 : f32
    %59 = vector.broadcast %cst : f32 to vector<8x128xf32>
    %60 = arith.addf %58, %59 : vector<8x128xf32>
    %61 = math.sqrt %60 : vector<8x128xf32>
    %c0_18 = arith.constant 0 : index
    %c0_19 = arith.constant 0 : index
    %c0_20 = arith.constant 0 : index
    %62 = vector.load %arg3[%c0_18, %c0_19, %c0_20] : memref<1x8x128xf32, #tpu.memory_space<vmem>>, vector<1x8x128xf32>
    %63 = vector.shape_cast %62 : vector<1x8x128xf32> to vector<8x128xf32>
    %c127_i32_21 = arith.constant 127 : i32
    %64 = tpu.dynamic_rotate %63 by %c127_i32_21 dim 1 : vector<8x128xf32>, i32 -> vector<8x128xf32>
    %c126_i32_22 = arith.constant 126 : i32
    %65 = tpu.dynamic_rotate %63 by %c126_i32_22 dim 1 : vector<8x128xf32>, i32 -> vector<8x128xf32>
    %66 = arith.subf %65, %63 : vector<8x128xf32>
    %67 = arith.addf %64, %64 : vector<8x128xf32>
    %68 = arith.addf %63, %67 : vector<8x128xf32>
    %69 = arith.addf %68, %65 : vector<8x128xf32>
    %c1 = arith.constant 1 : index
    %c0_23 = arith.constant 0 : index
    %c0_24 = arith.constant 0 : index
    %70 = vector.load %arg5[%c1, %c0_23, %c0_24] : memref<2x2x128xf32, #tpu.memory_space<vmem>>, vector<1x2x128xf32>
    %71 = vector.shape_cast %70 : vector<1x2x128xf32> to vector<2x128xf32>
    %c1_25 = arith.constant 1 : index
    %c0_26 = arith.constant 0 : index
    %c0_27 = arith.constant 0 : index
    %72 = vector.load %arg6[%c1_25, %c0_26, %c0_27] : memref<2x2x128xf32, #tpu.memory_space<vmem>>, vector<1x2x128xf32>
    %73 = vector.shape_cast %72 : vector<1x2x128xf32> to vector<2x128xf32>
    %c1_i32_28 = arith.constant 1 : i32
    %74 = tpu.dynamic_rotate %66 by %c1_i32_28 dim 0 : vector<8x128xf32>, i32 -> vector<8x128xf32>
    %75 = vector.extract_strided_slice %71 {offsets = [1, 0], sizes = [1, 128], strides = [1, 1]} : vector<2x128xf32> to vector<1x128xf32>
    %76 = vector.shape_cast %75 : vector<1x128xf32> to vector<1x128xf32>
    %77 = vector.broadcast %76 : vector<1x128xf32> to vector<8x128xf32>
    %78 = arith.select %6, %77, %74 : vector<8x128xi1>, vector<8x128xf32>
    %c2_i32_29 = arith.constant 2 : i32
    %79 = tpu.dynamic_rotate %66 by %c2_i32_29 dim 0 : vector<8x128xf32>, i32 -> vector<8x128xf32>
    %80 = vector.extract_strided_slice %71 {offsets = [0, 0], sizes = [1, 128], strides = [1, 1]} : vector<2x128xf32> to vector<1x128xf32>
    %81 = vector.extract_strided_slice %71 {offsets = [1, 0], sizes = [1, 128], strides = [1, 1]} : vector<2x128xf32> to vector<1x128xf32>
    %82 = vector.shape_cast %81 : vector<1x128xf32> to vector<1x128xf32>
    %83 = vector.broadcast %82 : vector<1x128xf32> to vector<8x128xf32>
    %84 = arith.select %8, %83, %79 : vector<8x128xi1>, vector<8x128xf32>
    %85 = vector.shape_cast %80 : vector<1x128xf32> to vector<1x128xf32>
    %86 = vector.broadcast %85 : vector<1x128xf32> to vector<8x128xf32>
    %87 = arith.select %6, %86, %84 : vector<8x128xi1>, vector<8x128xf32>
    %c2_i32_30 = arith.constant 2 : i32
    %88 = tpu.dynamic_rotate %69 by %c2_i32_30 dim 0 : vector<8x128xf32>, i32 -> vector<8x128xf32>
    %89 = vector.extract_strided_slice %73 {offsets = [0, 0], sizes = [1, 128], strides = [1, 1]} : vector<2x128xf32> to vector<1x128xf32>
    %90 = vector.extract_strided_slice %73 {offsets = [1, 0], sizes = [1, 128], strides = [1, 1]} : vector<2x128xf32> to vector<1x128xf32>
    %91 = vector.shape_cast %90 : vector<1x128xf32> to vector<1x128xf32>
    %92 = vector.broadcast %91 : vector<1x128xf32> to vector<8x128xf32>
    %93 = arith.select %8, %92, %88 : vector<8x128xi1>, vector<8x128xf32>
    %94 = vector.shape_cast %89 : vector<1x128xf32> to vector<1x128xf32>
    %95 = vector.broadcast %94 : vector<1x128xf32> to vector<8x128xf32>
    %96 = arith.select %6, %95, %93 : vector<8x128xi1>, vector<8x128xf32>
    %97 = vector.extract_strided_slice %66 {offsets = [6, 0], sizes = [2, 128], strides = [1, 1]} : vector<8x128xf32> to vector<2x128xf32>
    %c1_31 = arith.constant 1 : index
    %c0_32 = arith.constant 0 : index
    %c0_33 = arith.constant 0 : index
    %98 = vector.load %arg5[%c1_31, %c0_32, %c0_33] : memref<2x2x128xf32, #tpu.memory_space<vmem>>, vector<1x2x128xf32>
    %99 = vector.shape_cast %98 : vector<1x2x128xf32> to vector<2x128xf32>
    %100 = vector.shape_cast %97 : vector<2x128xf32> to vector<1x2x128xf32>
    tpu.vector_store %arg5[%c1_31, %c0_32, %c0_33], %100 {strides = array<i32>} : memref<2x2x128xf32, #tpu.memory_space<vmem>>, vector<1x2x128xf32>,
    %101 = vector.extract_strided_slice %69 {offsets = [6, 0], sizes = [2, 128], strides = [1, 1]} : vector<8x128xf32> to vector<2x128xf32>
    %c1_34 = arith.constant 1 : index
    %c0_35 = arith.constant 0 : index
    %c0_36 = arith.constant 0 : index
    %102 = vector.load %arg6[%c1_34, %c0_35, %c0_36] : memref<2x2x128xf32, #tpu.memory_space<vmem>>, vector<1x2x128xf32>
    %103 = vector.shape_cast %102 : vector<1x2x128xf32> to vector<2x128xf32>
    %104 = vector.shape_cast %101 : vector<2x128xf32> to vector<1x2x128xf32>
    tpu.vector_store %arg6[%c1_34, %c0_35, %c0_36], %104 {strides = array<i32>} : memref<2x2x128xf32, #tpu.memory_space<vmem>>, vector<1x2x128xf32>,
    %105 = arith.addf %78, %78 : vector<8x128xf32>
    %106 = arith.addf %87, %105 : vector<8x128xf32>
    %107 = arith.addf %106, %66 : vector<8x128xf32>
    %108 = arith.subf %69, %96 : vector<8x128xf32>
    %109 = arith.mulf %107, %107 : vector<8x128xf32>
    %110 = arith.mulf %108, %108 : vector<8x128xf32>
    %111 = arith.addf %109, %110 : vector<8x128xf32>
    %cst_37 = arith.constant 9.99999997E-7 : f32
    %112 = vector.broadcast %cst_37 : f32 to vector<8x128xf32>
    %113 = arith.addf %111, %112 : vector<8x128xf32>
    %114 = math.sqrt %113 : vector<8x128xf32>
    %c8_i32 = arith.constant 8 : i32
    %115 = arith.muli %arg1, %c8_i32 : i32
    %116 = vector.broadcast %115 : i32 to vector<8x128xi32>
    %117 = arith.addi %116, %3 : vector<8x128xi32>
    %c2_i32_38 = arith.constant 2 : i32
    %118 = vector.broadcast %c2_i32_38 : i32 to vector<8x128xi32>
    %119 = arith.subi %117, %118 : vector<8x128xi32>
    %c0_i32_39 = arith.constant 0 : i32
    %120 = vector.broadcast %c0_i32_39 : i32 to vector<8x128xi32>
    %121 = arith.cmpi sge, %119, %120 : vector<8x128xi32>
    %c18_i32 = arith.constant 18 : i32
    %122 = vector.broadcast %c18_i32 : i32 to vector<8x128xi32>
    %123 = arith.cmpi slt, %119, %122 : vector<8x128xi32>
    %124 = arith.andi %121, %123 : vector<8x128xi1>
    %c18_i32_40 = arith.constant 18 : i32
    %125 = vector.broadcast %c18_i32_40 : i32 to vector<8x128xi32>
    %126 = arith.cmpi slt, %4, %125 : vector<8x128xi32>
    %127 = arith.andi %124, %126 : vector<8x128xi1>
    %128 = arith.subf %61, %114 : vector<8x128xf32>
    %129 = math.absf %128 : vector<8x128xf32>
    %cst_41 = arith.constant 0.000000e+00 : f32
    %130 = vector.broadcast %cst_41 : f32 to vector<8x128xf32>
    %131 = arith.select %127, %129, %130 : vector<8x128xi1>, vector<8x128xf32>
    %c0_42 = arith.constant 0 : index
    %c0_43 = arith.constant 0 : index
    %c0_44 = arith.constant 0 : index
    %132 = vector.load %arg4[%c0_42, %c0_43, %c0_44] : memref<1x1x128xf32, #tpu.memory_space<vmem>>, vector<1x1x128xf32>
    %cst_45 = arith.constant dense<0.000000e+00> : vector<128xf32>
    %133 = vector.multi_reduction <add>, %131, %cst_45 [0] : vector<8x128xf32> to vector<128xf32>
    %134 = vector.shape_cast %133 : vector<128xf32> to vector<1x128xf32>
    %135 = vector.shape_cast %134 : vector<1x128xf32> to vector<1x1x128xf32>
    %136 = arith.addf %132, %135 : vector<1x1x128xf32>
    %c0_46 = arith.constant 0 : index
    %c0_47 = arith.constant 0 : index
    %c0_48 = arith.constant 0 : index
    %137 = vector.load %arg4[%c0_46, %c0_47, %c0_48] : memref<1x1x128xf32, #tpu.memory_space<vmem>>, vector<1x1x128xf32>
    tpu.vector_store %arg4[%c0_46, %c0_47, %c0_48], %136 {strides = array<i32>} : memref<1x1x128xf32, #tpu.memory_space<vmem>>, vector<1x1x128xf32>,
    return
  }
  func.func @transform_0(%arg0: i32, %arg1: i32) -> (i32, i32, i32) {
    %c0_i32 = arith.constant 0 : i32
    %c0_i32_0 = arith.constant 0 : i32
    return %arg0, %arg1, %c0_i32 : i32, i32, i32
  }
  func.func @transform_1(%arg0: i32, %arg1: i32) -> (i32, i32, i32) {
    %c0_i32 = arith.constant 0 : i32
    %c0_i32_0 = arith.constant 0 : i32
    return %arg0, %arg1, %c0_i32 : i32, i32, i32
  }
  func.func @transform_2(%arg0: i32, %arg1: i32) -> (i32, i32, i32) {
    %c0_i32 = arith.constant 0 : i32
    %c0_i32_0 = arith.constant 0 : i32
    %c0_i32_1 = arith.constant 0 : i32
    return %arg0, %c0_i32, %c0_i32_0 : i32, i32, i32
  }
}

</mosaic_0001>

<bundles_post_ra>
// kernel: grad_loss.1
= control target key start
LH: loop header
LB: loop body
LE: loop exit
PB: predicated region body
PF: predicated region fallthrough
CT: control target
= control target key end

     0   :  { %s532_s9 = smov 0   ;;  %s534_s10 = smov 0   ;;  %s626_s0 = inlined_call_operand.vmem [shape: f32[2,24,128], index: 0, kind: input, shape index: {}]   ;;  %s627_s1 = inlined_call_operand.vmem [shape: f32[2,24,128], index: 1, kind: input, shape index: {}]   ;;  %s628_s2 = inlined_call_operand.vmem [shape: f32[2,1,128], index: 2, kind: output, shape index: {}]  }
   0x1   :  { %s536_s11 = smov 0   ;;  %s538_s12 = smov 0  }
   0x2   :  { %s540_s13 = smov 0  }
   0x3 LB: > { %s21_s14 = sadd.s32 1, %s504_s11  ;;  %s24_s15 = sadd.s32 1, %s508_s12  ;;  %s512_s13 = sphi %s540_s13, %s12_s13   ;;  %s508_s12 = sphi %s538_s12, %s632_s12   ;;  %s504_s11 = sphi %s536_s11, %s631_s11   ;;  %s500_s10 = sphi %s534_s10, %s630_s10   ;;  %s496_s9 = sphi %s532_s9, %s629_s9  }
   0x4   : > { %p22_p0 = scmp.ge.s32.totalorder %s21_s14, 3  ;;  %p418_p1 = scmp.ge.s32.totalorder %s512_s13, 1 }
   0x5   : > { %p144_p2 = scmp.lt.s32.totalorder %s512_s13, 7 }
   0x6   : > { %s634_s14 = smov (%p22_p0, %s21_s14), 0  ;;  %s636_s15 = smov (!%p22_p0, %s24_s15), %s508_s12 }
   0x7   : > { %p145_p3 = pnand %p418_p1, %p144_p2  ;;  %p26_p4 = scmp.ge.s32.totalorder %s636_s15, 2 }
   0x8   : > { %p175_p5 = scmp.lt.s32.totalorder (!%p145_p3), %s500_s10, 1  ;;  %p177_p6 = scmp.lt.s32.totalorder (!%p145_p3), %s496_s9, 2 }
   0x9   : > { %s638_s15 = smov (%p26_p4, %s636_s15), 0  ;;  %148 = sbr.rel (%p145_p3) target bundleno = 202 (0xca), region = 28 }
   0xa   : > { %p421_p7 = scmp.ne.s32.totalorder (!%p145_p3), %s496_s9, 0 }
   0xe   : > { %s640_s10 = smov (!%p175_p5, %s500_s10), 1 }
   0xf   : > { %s178_s16 = scalar_select %p177_p6, %s496_s9, 2 }
  0x10   : > { %s426_s17 = smul.u32 3, %s640_s10  ;;  %s569_s20 = scalar_lea.vmem %s628_s2, %s640_s10 }
  0x11   : > { %197 = sbr.rel (%p421_p7) target bundleno = 24 (0x18), region = 32 }
  0x12   : > { %s180_s21 = sadd.s32 %s426_s17, %s178_s16 }
  0x13   : > { %s419_s22 = sshll.u32 %s180_s21, 3 }
  0x14   : > { %s182_s25 = scalar_lea.vmem %s626_s0, %s419_s22  ;;  %s190_s28 = scalar_lea.vmem %s627_s1, %s419_s22 }
  0x16   : > { %v514_v0 = vmov 0.0  }
  0x17   : > { %198 = vst [vmem:[%s569_s20] sm:$0x1] %v514_v0 }
  0x18 PF: > { %v205_v1 = vld [vmem:[%s182_s25] sm:$0xff]  ;;  %s515_s29 = smov 126   ;;  %s516_s30 = smov 127   ;;  %v199_v3 = vlaneseq }
  0x19   : > { %208 = vrot.lane.b32.xlu1 %v205_v1, %s515_s29  ;;  %206 = vrot.lane.b32.xlu0 %v205_v1, %s516_s30  ;;  %v257_v2 = vld [vmem:[%s190_s28] sm:$0xff]  ;;  %s422_s3 = sshll.u32 %s496_s9, 3 }
  0x1a   : > { %v580_v4 = vshrl.u32 %v199_v3, 7  ;;  %v214_v6 = vld [vmem:[#allocation2] sm:$0x3]  ;;  %v215_v12 = vld [vmem:[#allocation3] sm:$0x3]  ;;  %v312_v63 = vstv %s422_s3 }
  0x1b   : > { %v267_v14 = vld [vmem:[#allocation2 + $0x2] sm:$0x3]  ;;  %v269_v36 = vld [vmem:[#allocation3 + $0x2] sm:$0x3] }
  0x1c   : > { %v219_v5 = vsub.s32 1, %v580_v4  ;;  %v226_v7 = vsub.s32 0, %v580_v4  ;;  %vm203_vm0 = vcmp.eq.s32.totalorder %v580_v4, 0  ;;  %vm204_vm1 = vcmp.eq.s32.totalorder %v580_v4, 1 }
  0x1d   : > { %260 = vrot.lane.b32.xlu1 %v257_v2, %s515_s29  ;;  %258 = vrot.lane.b32.xlu0 %v257_v2, %s516_s30  ;;  %v313_v0 = vadd.s32 %v312_v63, %v580_v4 }
  0x1e   : > { %v220_v11 = vrot.slane %v214_v6, %v219_v5  ;;  %v227_v15 = vrot.slane %v214_v6, %v226_v7  ;;  %v233_v19 = vrot.slane %v215_v12, %v219_v5  ;;  %v238_v20 = vrot.slane %v215_v12, %v226_v7 }
  0x1f   : > { %v274_v22 = vrot.slane %v267_v14, %v219_v5  ;;  %v281_v30 = vrot.slane %v267_v14, %v226_v7  ;;  %v287_v47 = vrot.slane %v269_v36, %v219_v5  ;;  %v292_v50 = vrot.slane %v269_v36, %v226_v7 }
  0x20   : > { %v202_v6 = vand.u32 127, %v199_v3 }
  0x22   : > { %vm318_vm6 = vcmp.lt.s32.totalorder %v202_v6, 18 }
  0x8b   : > { %v209_v8 = vpop.permute.xlu1 %208  ;;  %v207_v9 = vpop.permute.xlu0 %206 }
  0x8c   : > { %v210_v10 = vsub.f32 %v209_v8, %v205_v1  ;;  %v211_v13 = vadd.f32 %v207_v9, %v207_v9 }
  0x8e   : > { %v216_v16 = vrot.slane %v210_v10, 7  ;;  %v222_v17 = vrot.slane %v210_v10, 6  ;;  %240 = vst [vmem:[#allocation2 - $0x6] sm:$0xc0] %v210_v10  ;;  %v212_v18 = vadd.f32 %v211_v13, %v205_v1 }
  0x8f   : > { %v261_v21 = vpop.permute.xlu1 %260  ;;  %v259_v23 = vpop.permute.xlu0 %258 }
  0x90   : > { %v221_v24 = vsel %vm203_vm0, %v220_v11, %v216_v16  ;;  %v223_v25 = vsel %vm204_vm1, %v220_v11, %v222_v17  ;;  %v213_v26 = vadd.f32 %v212_v18, %v209_v8  ;;  %v262_v27 = vsub.f32 %v261_v21, %v257_v2 }
  0x91   : > { %v228_v28 = vsel %vm203_vm0, %v227_v15, %v223_v25  ;;  %v242_v29 = vadd.f32 %v221_v24, %v221_v24  ;;  %v263_v31 = vadd.f32 %v259_v23, %v259_v23 }
  0x92   : > { %v229_v32 = vrot.slane %v213_v26, 6  ;;  %241 = vst [vmem:[#allocation3 - $0x6] sm:$0xc0] %v213_v26  ;;  %v270_v33 = vrot.slane %v262_v27, 7  ;;  %v276_v34 = vrot.slane %v262_v27, 6 }
  0x93   : > { %294 = vst [vmem:[#allocation2 - $0x4] sm:$0xc0] %v262_v27  ;;  %v243_v35 = vadd.f32 %v242_v29, %v228_v28  ;;  %v264_v37 = vadd.f32 %v263_v31, %v257_v2  ;;  %v423_v2 = vadd.s32 4294967294, %v313_v0 }
  0x94   : > { %v234_v38 = vsel %vm204_vm1, %v233_v19, %v229_v32  ;;  %v275_v39 = vsel %vm203_vm0, %v274_v22, %v270_v33  ;;  %v277_v40 = vsel %vm204_vm1, %v274_v22, %v276_v34 }
  0x95   : > { %v244_v41 = vadd.f32 %v243_v35, %v210_v10  ;;  %v239_v42 = vsel %vm203_vm0, %v238_v20, %v234_v38  ;;  %v282_v43 = vsel %vm203_vm0, %v281_v30, %v277_v40  ;;  %v296_v44 = vadd.f32 %v275_v39, %v275_v39 }
  0x96   : > { %v245_v45 = vsub.f32 %v213_v26, %v239_v42  ;;  %v265_v46 = vadd.f32 %v264_v37, %v261_v21  ;;  %vm315_vm3 = vcmp.ge.s32.totalorder %v423_v2, 0  ;;  %vm316_vm4 = vcmp.lt.s32.totalorder %v423_v2, 18  ;;  %v323_v21 = vld [vmem:[%s569_s20] sm:$0x1] }
  0x97   : > { %v246_v48 = vmul.f32 %v244_v41, %v244_v41  ;;  %v297_v49 = vadd.f32 %v296_v44, %v282_v43  ;;  %vm317_vm9 = vmand %vm315_vm3, %vm316_vm4 }
  0x98   : > { %v247_v51 = vmul.f32 %v245_v45, %v245_v45  ;;  %v283_v52 = vrot.slane %v265_v46, 6  ;;  %295 = vst [vmem:[#allocation3 - $0x4] sm:$0xc0] %v265_v46  ;;  %vm319_vm10 = vmand %vm317_vm9, %vm318_vm6 }
  0x99   : > { %v298_v53 = vadd.f32 %v297_v49, %v262_v27 }
  0x9a   : > { %v248_v54 = vadd.f32 %v247_v51, %v246_v48  ;;  %v288_v55 = vsel %vm204_vm1, %v287_v47, %v283_v52 }
  0x9b   : > { %v293_v56 = vsel %vm203_vm0, %v292_v50, %v288_v55  ;;  %v300_v59 = vmul.f32 %v298_v53, %v298_v53 }
  0x9c   : > { %v249_v57 = vadd.f32 1e-06, %v248_v54  ;;  %v299_v58 = vsub.f32 %v265_v46, %v293_v56 }
  0x9e   : > { %470 = vrsqrt.f32 %v249_v57  ;;  %v301_v60 = vmul.f32 %v299_v58, %v299_v58  ;;  %vm252_vm2 = vcmp.eq.f32.partialorder %v249_v57, inf  ;;  %v255_v10 = vand.u32 2147483648, %v249_v57 }
  0x9f   : > { %vm254_vm7 = vcmp.eq.f32.partialorder %v249_v57, 0.0 }
  0xa0   : > { %v302_v61 = vadd.f32 %v301_v60, %v300_v59 }
  0xa2   : > { %v303_v62 = vadd.f32 1e-06, %v302_v61 }
  0xa4   : > { %472 = vrsqrt.f32 %v303_v62  ;;  %vm306_vm5 = vcmp.eq.f32.partialorder %v303_v62, inf  ;;  %v309_v11 = vand.u32 2147483648, %v303_v62  ;;  %vm308_vm8 = vcmp.eq.f32.partialorder %v303_v62, 0.0 }
  0xab   : > { %v471_v1 = vpop.eup %470 }
  0xac   : > { %v251_v5 = vmul.f32 %v471_v1, %v249_v57 }
  0xae   : > { %v253_v8 = vsel %vm252_vm2, %v249_v57, %v251_v5 }
  0xaf   : > { %v256_v4 = vsel %vm254_vm7, %v255_v10, %v253_v8 }
  0xb1   : > { %v473_v7 = vpop.eup %472 }
  0xb2   : > { %v305_v9 = vmul.f32 %v473_v7, %v303_v62 }
  0xb4   : > { %v307_v12 = vsel %vm306_vm5, %v303_v62, %v305_v9 }
  0xb5   : > { %v310_v13 = vsel %vm308_vm8, %v309_v11, %v307_v12 }
  0xb6   : > { %v320_v14 = vsub.f32 %v256_v4, %v310_v13 }
  0xb8   : > { %v321_v3 = vand.u32 2147483647, %v320_v14 }
  0xba   : > { %v322_v15 = vsel %vm319_vm10, %v321_v3, 0.0 }
  0xbb   : > { %v324_v16 = vrot.slane %v322_v15, 4 }
  0xbd   : > { %v325_v17 = vadd.f32 %v324_v16, %v322_v15 }
  0xbf   : > { %v326_v18 = vrot.slane %v325_v17, 2 }
  0xc1   : > { %v327_v19 = vadd.f32 %v326_v18, %v325_v17 }
  0xc3   : > { %v328_v20 = vrot.slane %v327_v19, 1 }
  0xc5   : > { %v329_v22 = vadd.f32 %v328_v20, %v327_v19 }
  0xc7   : > { %v330_v23 = vadd.f32 %v329_v22, %v323_v21 }
  0xc9   : > { %331 = vst [vmem:[%s569_s20] sm:$0x1] %v330_v23 }
  0xca PF: > { %s12_s13 = sadd.s32 1, %s512_s13   ;;  %s629_s9 = smov %s504_s11 }
  0xcb   : > { %p9_p8 = scmp.ge.s32.totalorder %s12_s13, 8   ;;  %s630_s10 = smov %s508_s12 }
  0xcc   : > { %s631_s11 = smov %s634_s14  ;;  %s632_s12 = smov %s638_s15 }
  0xcd   :  { %11 = sbr.rel (!%p9_p8) target bundleno = 3 (0x3), region = 67 }

</bundles_post_ra>
